<compile_context>
chip_gen: v7x
topology: tpu7x:2x2x1
jax: 0.10.0
libtpu: 0.0.40
codegen_flags: <defaults>
</compile_context>

<pallas_src>
import functools

import jax
import jax.numpy as jnp
from jax import lax
from jax.experimental import pallas as pl
from jax.experimental.pallas import tpu as pltpu

_LANE = 128
_SUBLANE = 8


def _round_up(x: int, m: int) -> int:
    return ((x + m - 1) // m) * m


def _driftnet_kernel(z_ref, w_ref, out_ref, *, dim_z, dim_z_pad, chunk, n_chunks):
    """One batch tile.

    z_ref:   (n_chunks, 2, chunk)      lane-dense z chunks (batch on lanes)
    w_ref:   (dim_z_pad, 10)           resident Linear(10, dim_z) weight
    out_ref: (n_chunks * chunk, dim_z) native (batch, dim_z) output tile
    """
    w = w_ref[...].astype(jnp.float32)
    # Hoist the 10 weight-column lane-broadcasts once per kernel invocation.
    wb = [jnp.broadcast_to(w[:, k:k + 1], (dim_z_pad, chunk)) for k in range(10)]

    def chunk_body(c, carry):
        start = c * chunk
        if not isinstance(start, int):
            start = pl.multiple_of(start, chunk)
        zc = z_ref[c, :, :].astype(jnp.float32)       # (2, chunk), batch on lanes
        z1 = zc[0:1, :]
        z2 = zc[1:2, :]
        z11 = z1 * z1
        z12 = z1 * z2
        z22 = z2 * z2
        z111 = z1 * z11
        z112 = z1 * z12
        z122 = z2 * z12
        z222 = z2 * z22
        # Rank-1 VPU accumulation; the constant-one feature is folded into the
        # accumulator init.  acc stays register-resident across all 10 terms.
        acc = wb[0]
        acc = acc + wb[1] * z1
        acc = acc + wb[2] * z2
        acc = acc + wb[3] * z11
        acc = acc + wb[4] * z12
        acc = acc + wb[5] * z22
        acc = acc + wb[6] * z111
        acc = acc + wb[7] * z112
        acc = acc + wb[8] * z122
        acc = acc + wb[9] * z222
        # Single store pass in the module's native (batch, dim_z) layout; the
        # aligned (dim_z_pad, chunk) -> (chunk, dim_z_pad) transpose rides the
        # XLU slot and overlaps the VPU FMAs of neighbouring chunks.
        acc_t = jnp.transpose(acc)                    # (chunk, dim_z_pad)
        if dim_z_pad != dim_z:
            acc_t = acc_t[:, :dim_z]
        out_ref[pl.ds(start, chunk), :] = acc_t.astype(out_ref.dtype)
        return carry

    if n_chunks == 1:
        chunk_body(0, 0)
    else:
        lax.fori_loop(0, n_chunks, chunk_body, 0, unroll=(n_chunks <= 8))


def driftnet_forward(mu, t, z, f, weight, *, max_batch_tile=8192):
    """DriftNet.forward.  weight: (dim_z, 10) from nn.Linear(10, dim_z, bias=False)."""
    del mu, t, f  # accepted but unused, exactly as in the PyTorch forward
    n_batch = z.shape[0]
    dim_z = weight.shape[0]
    dim_z_pad = _round_up(dim_z, _SUBLANE)

    # Lane-chunk sized so the per-chunk (dim_z_pad, chunk) f32 accumulator stays
    # register-resident (<= ~8 vregs for small dim_z).
    # TODO(synk): very large dim_z (>~512) would additionally want dim_z chunking.
    chunk = max(_LANE, min(1024, ((8192 // dim_z_pad) // _LANE) * _LANE))

    # Pad the batch to the chunk granule only (not to a full tile).
    b_pad = _round_up(max(n_batch, 1), chunk)

    # VMEM-aware tile cap: double-buffered (z + out) blocks stay <= ~12 MiB,
    # comfortable even on v7x (64 MiB physical VMEM, 32 MiB default scoped).
    block_budget = 6 * 1024 * 1024
    tile_cap = max(chunk, (block_budget // ((dim_z_pad + 2) * 4) // chunk) * chunk)
    max_tile = max(chunk, (min(max_batch_tile, tile_cap) // chunk) * chunk)

    # Few large tiles, but >=2 grid steps once there is enough work so both
    # TensorCores can engage on v7x ("parallel" grid axis).
    num_tiles = max(pl.cdiv(b_pad, max_tile), min(4, b_pad // 2048), 1)
    tile = _round_up(pl.cdiv(b_pad, num_tiles), chunk)
    b_pad = tile * num_tiles
    n_chunks = tile // chunk
    total_chunks = b_pad // chunk

    z_in = z.astype(jnp.float32)
    if b_pad != n_batch:
        z_in = jnp.pad(z_in, ((0, b_pad - n_batch), (0, 0)))
    # Lane-dense chunked layout for z: (total_chunks, 2, chunk), batch on lanes.
    # z is only 8 bytes/row; the dim_z-times-larger output never leaves the
    # module's native layout, so no wrapper-side output transpose exists.
    z_c = jnp.transpose(z_in.reshape(total_chunks, chunk, 2), (0, 2, 1))

    w = weight.astype(jnp.float32)
    if dim_z_pad != dim_z:
        w = jnp.pad(w, ((0, dim_z_pad - dim_z), (0, 0)))

    kernel = functools.partial(
        _driftnet_kernel, dim_z=dim_z, dim_z_pad=dim_z_pad, chunk=chunk,
        n_chunks=n_chunks)

    out = pl.pallas_call(
        kernel,
        out_shape=jax.ShapeDtypeStruct((b_pad, dim_z), jnp.float32),
        grid=(num_tiles,),
        in_specs=[
            pl.BlockSpec((n_chunks, 2, chunk), lambda i: (i, 0, 0)),
            pl.BlockSpec((dim_z_pad, 10), lambda i: (0, 0)),   # resident weight
        ],
        out_specs=pl.BlockSpec((tile, dim_z), lambda i: (i, 0)),
        compiler_params=pltpu.CompilerParams(
            dimension_semantics=("parallel",),
            vmem_limit_bytes=32 * 1024 * 1024),
    )(z_c, w)

    return out if b_pad == n_batch else out[:n_batch]


def _poly_reference(z, weight):
    z1, z2 = z[:, 0:1], z[:, 1:2]
    poly = jnp.concatenate(
        (jnp.ones_like(z1), z1, z2, z1 * z1, z1 * z2, z2 * z2,
         z1 ** 3, z1 * z1 * z2, z1 * z2 * z2, z2 ** 3), axis=-1)
    return poly @ weight.T


if __name__ == "__main__":
    key = jax.random.PRNGKey(0)
    k_z, k_w, k_zb, k_w2, k_z2 = jax.random.split(key, 5)

    n_batch, dim_z = 8, 32
    mu = jnp.zeros((n_batch, 4), jnp.float32)   # unused by forward
    t = jnp.zeros((n_batch, 1), jnp.float32)    # unused by forward
    z = jax.random.normal(k_z, (n_batch, 2), jnp.float32)
    f = jnp.zeros((n_batch, 2), jnp.float32)    # unused by forward

    # 1) Module-faithful call: zero-initialized weight (nn.init.zeros_).
    w0 = jnp.zeros((dim_z, 10), jnp.float32)
    dz0 = jax.block_until_ready(driftnet_forward(mu, t, z, f, w0))
    assert dz0.shape == (n_batch, dim_z)
    assert jnp.allclose(dz0, jnp.zeros((n_batch, dim_z)), atol=1e-6)

    # 2) Non-vacuous check with a random weight (single-tile, single-chunk path).
    w = jax.random.normal(k_w, (dim_z, 10), jnp.float32)
    dz = jax.block_until_ready(driftnet_forward(mu, t, z, f, w))
    assert dz.shape == (n_batch, dim_z)
    assert jnp.allclose(dz, _poly_reference(z, w), atol=1e-4, rtol=1e-4), \
        "mismatch vs reference (small batch)"

    # 3) Grid path + inner chunk loop + chunk-granule padding: B=1300, tiles of 768.
    n_big = 1300
    z_big = jax.random.normal(k_zb, (n_big, 2), jnp.float32)
    zeros = lambda s: jnp.zeros(s, jnp.float32)
    dz_big = jax.block_until_ready(
        driftnet_forward(zeros((n_big, 4)), zeros((n_big, 1)), z_big,
                         zeros((n_big, 2)), w, max_batch_tile=1024))
    assert dz_big.shape == (n_big, dim_z)
    assert jnp.allclose(dz_big, _poly_reference(z_big, w), atol=1e-4, rtol=1e-4), \
        "mismatch vs reference (tiled)"

    # 4) dim_z not a multiple of 8 (exercises dim_z_pad + lane-slice path).
    dim_z2, n_small = 6, 17
    w2 = jax.random.normal(k_w2, (dim_z2, 10), jnp.float32)
    z2 = jax.random.normal(k_z2, (n_small, 2), jnp.float32)
    dz2 = jax.block_until_ready(
        driftnet_forward(zeros((n_small, 4)), zeros((n_small, 1)), z2,
                         zeros((n_small, 2)), w2))
    assert dz2.shape == (n_small, dim_z2)
    assert jnp.allclose(dz2, _poly_reference(z2, w2), atol=1e-4, rtol=1e-4), \
        "mismatch vs reference (padded dim_z)"

    print("KERNEL_OK")
</pallas_src>

<mosaic_0001>
module attributes {stable_mosaic.version = 11 : i64} {
  func.func @_driftnet_kernel(%arg0: i32, %arg1: memref<1x2x256xf32, #tpu.memory_space<vmem>>, %arg2: memref<32x10xf32, #tpu.memory_space<vmem>>, %arg3: memref<256x32xf32, #tpu.memory_space<vmem>>) attributes {dimension_semantics = [#tpu.dimension_semantics<parallel>], iteration_bounds = array<i64: 1>, scalar_prefetch = 0 : i64, scratch_operands = 0 : i64, tpu.core_type = #tpu.core_type<tc>, window_params = [{transform_indices = @transform_0, window_bounds = array<i64: 1, 2, 256>}, {pipeline_mode = #tpu.pipeline_mode<synchronous>, transform_indices = @transform_1, window_bounds = array<i64: 32, 10>}, {transform_indices = @transform_2, window_bounds = array<i64: 256, 32>}]} {
    %c0 = arith.constant 0 : index
    %c0_0 = arith.constant 0 : index
    %0 = vector.load %arg2[%c0, %c0_0] : memref<32x10xf32, #tpu.memory_space<vmem>>, vector<32x10xf32>
    %1 = vector.extract_strided_slice %0 {offsets = [0, 0], sizes = [32, 1], strides = [1, 1]} : vector<32x10xf32> to vector<32x1xf32>
    %2 = vector.shape_cast %1 : vector<32x1xf32> to vector<32x1xf32>
    %3 = vector.broadcast %2 : vector<32x1xf32> to vector<32x256xf32>
    %4 = vector.extract_strided_slice %0 {offsets = [0, 1], sizes = [32, 1], strides = [1, 1]} : vector<32x10xf32> to vector<32x1xf32>
    %5 = vector.shape_cast %4 : vector<32x1xf32> to vector<32x1xf32>
    %6 = vector.broadcast %5 : vector<32x1xf32> to vector<32x256xf32>
    %7 = vector.extract_strided_slice %0 {offsets = [0, 2], sizes = [32, 1], strides = [1, 1]} : vector<32x10xf32> to vector<32x1xf32>
    %8 = vector.shape_cast %7 : vector<32x1xf32> to vector<32x1xf32>
    %9 = vector.broadcast %8 : vector<32x1xf32> to vector<32x256xf32>
    %10 = vector.extract_strided_slice %0 {offsets = [0, 3], sizes = [32, 1], strides = [1, 1]} : vector<32x10xf32> to vector<32x1xf32>
    %11 = vector.shape_cast %10 : vector<32x1xf32> to vector<32x1xf32>
    %12 = vector.broadcast %11 : vector<32x1xf32> to vector<32x256xf32>
    %13 = vector.extract_strided_slice %0 {offsets = [0, 4], sizes = [32, 1], strides = [1, 1]} : vector<32x10xf32> to vector<32x1xf32>
    %14 = vector.shape_cast %13 : vector<32x1xf32> to vector<32x1xf32>
    %15 = vector.broadcast %14 : vector<32x1xf32> to vector<32x256xf32>
    %16 = vector.extract_strided_slice %0 {offsets = [0, 5], sizes = [32, 1], strides = [1, 1]} : vector<32x10xf32> to vector<32x1xf32>
    %17 = vector.shape_cast %16 : vector<32x1xf32> to vector<32x1xf32>
    %18 = vector.broadcast %17 : vector<32x1xf32> to vector<32x256xf32>
    %19 = vector.extract_strided_slice %0 {offsets = [0, 6], sizes = [32, 1], strides = [1, 1]} : vector<32x10xf32> to vector<32x1xf32>
    %20 = vector.shape_cast %19 : vector<32x1xf32> to vector<32x1xf32>
    %21 = vector.broadcast %20 : vector<32x1xf32> to vector<32x256xf32>
    %22 = vector.extract_strided_slice %0 {offsets = [0, 7], sizes = [32, 1], strides = [1, 1]} : vector<32x10xf32> to vector<32x1xf32>
    %23 = vector.shape_cast %22 : vector<32x1xf32> to vector<32x1xf32>
    %24 = vector.broadcast %23 : vector<32x1xf32> to vector<32x256xf32>
    %25 = vector.extract_strided_slice %0 {offsets = [0, 8], sizes = [32, 1], strides = [1, 1]} : vector<32x10xf32> to vector<32x1xf32>
    %26 = vector.shape_cast %25 : vector<32x1xf32> to vector<32x1xf32>
    %27 = vector.broadcast %26 : vector<32x1xf32> to vector<32x256xf32>
    %28 = vector.extract_strided_slice %0 {offsets = [0, 9], sizes = [32, 1], strides = [1, 1]} : vector<32x10xf32> to vector<32x1xf32>
    %29 = vector.shape_cast %28 : vector<32x1xf32> to vector<32x1xf32>
    %30 = vector.broadcast %29 : vector<32x1xf32> to vector<32x256xf32>
    %c0_1 = arith.constant 0 : index
    %c0_2 = arith.constant 0 : index
    %c0_3 = arith.constant 0 : index
    %31 = vector.load %arg1[%c0_1, %c0_2, %c0_3] : memref<1x2x256xf32, #tpu.memory_space<vmem>>, vector<1x2x256xf32>
    %32 = vector.shape_cast %31 : vector<1x2x256xf32> to vector<2x256xf32>
    %33 = vector.extract_strided_slice %32 {offsets = [0, 0], sizes = [1, 256], strides = [1, 1]} : vector<2x256xf32> to vector<1x256xf32>
    %34 = vector.extract_strided_slice %32 {offsets = [1, 0], sizes = [1, 256], strides = [1, 1]} : vector<2x256xf32> to vector<1x256xf32>
    %35 = arith.mulf %33, %33 : vector<1x256xf32>
    %36 = arith.mulf %33, %34 : vector<1x256xf32>
    %37 = arith.mulf %34, %34 : vector<1x256xf32>
    %38 = arith.mulf %33, %35 : vector<1x256xf32>
    %39 = arith.mulf %33, %36 : vector<1x256xf32>
    %40 = arith.mulf %34, %36 : vector<1x256xf32>
    %41 = arith.mulf %34, %37 : vector<1x256xf32>
    %42 = vector.broadcast %33 : vector<1x256xf32> to vector<32x256xf32>
    %43 = arith.mulf %6, %42 : vector<32x256xf32>
    %44 = arith.addf %3, %43 : vector<32x256xf32>
    %45 = vector.broadcast %34 : vector<1x256xf32> to vector<32x256xf32>
    %46 = arith.mulf %9, %45 : vector<32x256xf32>
    %47 = arith.addf %44, %46 : vector<32x256xf32>
    %48 = vector.broadcast %35 : vector<1x256xf32> to vector<32x256xf32>
    %49 = arith.mulf %12, %48 : vector<32x256xf32>
    %50 = arith.addf %47, %49 : vector<32x256xf32>
    %51 = vector.broadcast %36 : vector<1x256xf32> to vector<32x256xf32>
    %52 = arith.mulf %15, %51 : vector<32x256xf32>
    %53 = arith.addf %50, %52 : vector<32x256xf32>
    %54 = vector.broadcast %37 : vector<1x256xf32> to vector<32x256xf32>
    %55 = arith.mulf %18, %54 : vector<32x256xf32>
    %56 = arith.addf %53, %55 : vector<32x256xf32>
    %57 = vector.broadcast %38 : vector<1x256xf32> to vector<32x256xf32>
    %58 = arith.mulf %21, %57 : vector<32x256xf32>
    %59 = arith.addf %56, %58 : vector<32x256xf32>
    %60 = vector.broadcast %39 : vector<1x256xf32> to vector<32x256xf32>
    %61 = arith.mulf %24, %60 : vector<32x256xf32>
    %62 = arith.addf %59, %61 : vector<32x256xf32>
    %63 = vector.broadcast %40 : vector<1x256xf32> to vector<32x256xf32>
    %64 = arith.mulf %27, %63 : vector<32x256xf32>
    %65 = arith.addf %62, %64 : vector<32x256xf32>
    %66 = vector.broadcast %41 : vector<1x256xf32> to vector<32x256xf32>
    %67 = arith.mulf %30, %66 : vector<32x256xf32>
    %68 = arith.addf %65, %67 : vector<32x256xf32>
    %69 = tpu.transpose %68, [1, 0] : vector<32x256xf32> -> vector<256x32xf32>
    %c0_4 = arith.constant 0 : index
    %c0_5 = arith.constant 0 : index
    %70 = vector.load %arg3[%c0_4, %c0_5] : memref<256x32xf32, #tpu.memory_space<vmem>>, vector<256x32xf32>
    tpu.vector_store %arg3[%c0_4, %c0_5], %69 {strides = array<i32>} : memref<256x32xf32, #tpu.memory_space<vmem>>, vector<256x32xf32>,
    return
  }
  func.func @transform_0(%arg0: i32) -> (i32, i32, i32) {
    %c0_i32 = arith.constant 0 : i32
    %c0_i32_0 = arith.constant 0 : i32
    %c0_i32_1 = arith.constant 0 : i32
    return %arg0, %c0_i32, %c0_i32_0 : i32, i32, i32
  }
  func.func @transform_1(%arg0: i32) -> (i32, i32) {
    %c0_i32 = arith.constant 0 : i32
    %c0_i32_0 = arith.constant 0 : i32
    %c0_i32_1 = arith.constant 0 : i32
    return %c0_i32, %c0_i32_0 : i32, i32
  }
  func.func @transform_2(%arg0: i32) -> (i32, i32) {
    %c0_i32 = arith.constant 0 : i32
    %c0_i32_0 = arith.constant 0 : i32
    return %arg0, %c0_i32 : i32, i32
  }
}

</mosaic_0001>

<bundles_post_ra>
// kernel: tpu_custom_call.1
= control target key start
LH: loop header
LB: loop body
LE: loop exit
PB: predicated region body
PF: predicated region fallthrough
CT: control target
= control target key end

     0   :  { %v642_v0 = vmov 0   ;;  %v643_v5 = vmov 1   ;;  %v644_v6 = vmov 2   ;;  %v645_v7 = vmov 3   ;;  %s1092_s1 = inlined_call_operand.vmem [shape: f32[32,10], index: 1, kind: input, shape index: {}]   ;;  %s1093_s0 = inlined_call_operand.vmem [shape: f32[1,2,256], index: 0, kind: input, shape index: {}]   ;;  %s1094_s2 = inlined_call_operand.vmem [shape: f32[256,32], index: 2, kind: output, shape index: {}]  }
   0x1   :  { %616 = vset.pattern.permute.xlu1 %v642_v0  ;;  %615 = vset.pattern.permute.xlu0 %v642_v0  ;;  %v670_v1 = vld [vmem:[%s1092_s1 + $0x10] sm:$0xff]  ;;  %v675_v2 = vld [vmem:[%s1092_s1] sm:$0xff]  ;;  %v682_v3 = vld [vmem:[%s1092_s1 + $0x18] sm:$0xff]  ;;  %v646_v8 = vmov 4   ;;  %v647_v9 = vmov 5   ;;  %v648_v10 = vmov 7   ;;  %v192_v30 = vlaneseq }
   0x2   :  { %27 = vperm.xlu1 %616, %v670_v1   ;;  %17 = vperm.xlu0 %615, %v675_v2   ;;  %v687_v4 = vld [vmem:[%s1092_s1 + $0x8] sm:$0xff]  ;;  %v649_v11 = vmov 6   ;;  %v650_v12 = vmov 9   ;;  %v651_v13 = vmov 8   ;;  %v179_v38 = vld [vmem:[%s1093_s0] sm:$0xf] }
   0x3   :  { %v193_v33 = vshrl.u32 %v192_v30, 7  ;;  %v603_v41 = vrot.slane %v179_v38, 9  ;;  %v180_v44 = vmul.f32 %v179_v38, %v179_v38  ;;  %vm566_vm0 = vcmask 261120  }
   0x5   :  { %v194_v35 = vsub.s32 0, %v193_v33  ;;  %v198_v36 = vsub.s32 2, %v193_v33  ;;  %v762_v39 = vsub.s32 1, %v193_v33  ;;  %v764_v40 = vsub.s32 3, %v193_v33 }
   0x6   :  { %32 = vperm.xlu1 %616, %v682_v3   ;;  %22 = vperm.xlu0 %615, %v687_v4   ;;  %v185_v49 = vmul.f32 %v603_v41, %v179_v38  ;;  %v778_v55 = vmul.f32 %v180_v44, %v179_v38 }
   0x7   :  { %v195_v42 = vrot.slane %v179_v38, %v194_v35  ;;  %v199_v43 = vrot.slane %v179_v38, %v198_v36  ;;  %v229_v47 = vrot.slane %v179_v38, %v762_v39  ;;  %v233_v48 = vrot.slane %v179_v38, %v764_v40 }
   0x8   :  { %v264_v52 = vrot.slane %v180_v44, %v194_v35  ;;  %v268_v53 = vrot.slane %v180_v44, %v198_v36  ;;  %v298_v61 = vrot.slane %v185_v49, %v194_v35  ;;  %v187_v62 = vmul.f32 %v185_v49, %v179_v38 }
   0x9   :  { %v772_v50 = vrot.slane %v195_v42, %v194_v35  ;;  %v774_v51 = vrot.slane %v199_v43, %v194_v35  ;;  %v783_v58 = vrot.slane %v229_v47, %v762_v39  ;;  %v786_v59 = vrot.slane %v233_v48, %v762_v39 }
   0xa   :  { %618 = vset.pattern.permute.xlu1 %v643_v5  ;;  %617 = vset.pattern.permute.xlu0 %v643_v5  ;;  %v790_v63 = vrot.slane %v264_v52, %v194_v35  ;;  %v792_v0 = vrot.slane %v268_v53, %v194_v35  ;;  %v371_v5 = vrot.slane %v778_v55, %v198_v36 }
   0xb   :  { %40 = vperm.xlu1 %618, %v687_v4   ;;  %36 = vperm.xlu0 %617, %v675_v2  }
   0xf   :  { %44 = vperm.xlu1 %618, %v670_v1   ;;  %48 = vperm.xlu0 %617, %v682_v3  }
  0x13   :  { %619 = vset.pattern.permute.xlu1 %v644_v6  ;;  %620 = vset.pattern.permute.xlu0 %v644_v6  ;;  %v189_v6 = vrot.slane %v185_v49, 7 }
  0x14   :  { %52 = vperm.xlu1 %619, %v675_v2   ;;  %56 = vperm.xlu0 %620, %v687_v4  }
  0x15   :  { %v191_v47 = vmul.f32 %v189_v6, %v179_v38 }
  0x18   :  { %60 = vperm.xlu1 %619, %v670_v1   ;;  %621 = vset.pattern.permute.xlu0 %v645_v7 }
  0x19   :  { %68 = vperm.xlu0 %621, %v675_v2  }
  0x1c   :  { %64 = vperm.xlu1 %619, %v682_v3  }
  0x1d   :  { %80 = vperm.xlu0 %621, %v682_v3  }
  0x20   :  { %622 = vset.pattern.permute.xlu1 %v645_v7 }
  0x21   :  { %72 = vperm.xlu1 %622, %v687_v4   ;;  %624 = vset.pattern.permute.xlu0 %v646_v8 }
  0x22   :  { %88 = vperm.xlu0 %624, %v687_v4  }
  0x25   :  { %76 = vperm.xlu1 %622, %v670_v1  }
  0x26   :  { %627 = vset.pattern.permute.xlu0 %v647_v9 }
  0x27   :  { %104 = vperm.xlu0 %627, %v687_v4  }
  0x29   :  { %623 = vset.pattern.permute.xlu1 %v646_v8 }
  0x2a   :  { %84 = vperm.xlu1 %623, %v675_v2  }
  0x2b   :  { %108 = vperm.xlu0 %627, %v670_v1  }
  0x2e   :  { %625 = vset.pattern.permute.xlu1 %v647_v9 }
  0x2f   :  { %100 = vperm.xlu1 %625, %v675_v2   ;;  %631 = vset.pattern.permute.xlu0 %v648_v10 }
  0x30   :  { %132 = vperm.xlu0 %631, %v675_v2  }
  0x33   :  { %626 = vset.pattern.permute.xlu1 %v646_v8 }
  0x34   :  { %92 = vperm.xlu1 %626, %v670_v1   ;;  %136 = vperm.xlu0 %631, %v687_v4  }
  0x38   :  { %628 = vset.pattern.permute.xlu1 %v649_v11  ;;  %635 = vset.pattern.permute.xlu0 %v649_v11 }
  0x39   :  { %116 = vperm.xlu1 %628, %v675_v2   ;;  %128 = vperm.xlu0 %635, %v682_v3  }
  0x3d   :  { %629 = vset.pattern.permute.xlu1 %v646_v8  ;;  %638 = vset.pattern.permute.xlu0 %v650_v12 }
  0x3e   :  { %96 = vperm.xlu1 %629, %v682_v3   ;;  %164 = vperm.xlu0 %638, %v675_v2  }
  0x42   :  { %630 = vset.pattern.permute.xlu1 %v649_v11  ;;  %168 = vperm.xlu0 %638, %v687_v4  }
  0x43   :  { %120 = vperm.xlu1 %630, %v687_v4  }
  0x46   :  { %172 = vperm.xlu0 %638, %v670_v1  }
  0x47   :  { %632 = vset.pattern.permute.xlu1 %v647_v9 }
  0x48   :  { %112 = vperm.xlu1 %632, %v682_v3  }
  0x4c   :  { %633 = vset.pattern.permute.xlu1 %v649_v11 }
  0x4d   :  { %124 = vperm.xlu1 %633, %v670_v1  }
  0x51   :  { %634 = vset.pattern.permute.xlu1 %v651_v13 }
  0x52   :  { %148 = vperm.xlu1 %634, %v675_v2   ;;  %v332_v2 = vrot.slane %v180_v44, %v762_v39 }
  0x54   :  { %v809_v43 = vrot.slane %v332_v2, %v762_v39 }
  0x56   :  { %636 = vset.pattern.permute.xlu1 %v648_v10 }
  0x57   :  { %140 = vperm.xlu1 %636, %v670_v1  }
  0x5b   :  { %637 = vset.pattern.permute.xlu1 %v651_v13 }
  0x5c   :  { %152 = vperm.xlu1 %637, %v687_v4   ;;  %v367_v4 = vrot.slane %v778_v55, %v194_v35 }
  0x60   :  { %639 = vset.pattern.permute.xlu1 %v648_v10 }
  0x61   :  { %144 = vperm.xlu1 %639, %v682_v3  }
  0x65   :  { %640 = vset.pattern.permute.xlu1 %v651_v13  ;;  %v402_v13 = vrot.slane %v187_v62, %v194_v35 }
  0x66   :  { %156 = vperm.xlu1 %640, %v670_v1   ;;  %v302_v1 = vrot.slane %v185_v49, %v198_v36 }
  0x68   :  { %v806_v42 = vrot.slane %v302_v1, %v194_v35 }
  0x6a   :  { %160 = vperm.xlu1 %640, %v682_v3  }
  0x6e   :  { %641 = vset.pattern.permute.xlu1 %v650_v12  ;;  %v800_v12 = vrot.slane %v298_v61, %v194_v35 }
  0x6f   :  { %176 = vperm.xlu1 %641, %v682_v3   ;;  %v336_v3 = vrot.slane %v180_v44, %v764_v40  ;;  %v816_v44 = vrot.slane %v371_v5, %v194_v35 }
  0x81   :  { %v727_v14 = vpop.permute.xlu1 %27  ;;  %v18_v16 = vpop.permute.xlu0 %17 }
  0x85   :  { %v729_v15 = vpop.permute.xlu1 %32  ;;  %v733_v18 = vpop.permute.xlu0 %22 }
  0x8a   :  { %v731_v17 = vpop.permute.xlu1 %40  ;;  %v37_v20 = vpop.permute.xlu0 %36 }
  0x8b   :  { %v210_v56 = vmul.f32 %v772_v50, %v37_v20  ;;  %v211_v57 = vmul.f32 %v774_v51, %v37_v20  ;;  %v406_v20 = vrot.slane %v187_v62, %v198_v36  ;;  %v212_v53 = vmul.f32 %v772_v50, %v731_v17 }
  0x8d   :  { %v218_v7 = vadd.f32 %v210_v56, %v18_v16  ;;  %v219_v8 = vadd.f32 %v211_v57, %v18_v16  ;;  %v812_v16 = vrot.slane %v336_v3, %v762_v39  ;;  %v213_v56 = vmul.f32 %v774_v51, %v731_v17 }
  0x8e   :  { %v735_v19 = vpop.permute.xlu1 %44  ;;  %v739_v23 = vpop.permute.xlu0 %48  ;;  %v828_v57 = vrot.slane %v402_v13, %v194_v35  ;;  %v830_v61 = vrot.slane %v406_v20, %v194_v35 }
  0x93   :  { %v53_v21 = vpop.permute.xlu1 %52  ;;  %v743_v25 = vpop.permute.xlu0 %56 }
  0x94   :  { %v244_v9 = vmul.f32 %v783_v58, %v53_v21  ;;  %v245_v10 = vmul.f32 %v786_v59, %v53_v21  ;;  %v814_v21 = vrot.slane %v367_v4, %v194_v35  ;;  %v246_v3 = vmul.f32 %v783_v58, %v743_v25 }
  0x95   :  { %v247_v17 = vmul.f32 %v786_v59, %v743_v25  ;;  %v437_v4 = vrot.slane %v191_v47, %v762_v39  ;;  %v441_v35 = vrot.slane %v191_v47, %v764_v40  ;;  %v475_v25 = vrot.slane %v778_v55, %v764_v40 }
  0x96   :  { %v252_v36 = vadd.f32 %v244_v9, %v218_v7  ;;  %v253_v48 = vadd.f32 %v245_v10, %v219_v8  ;;  %v220_v8 = vadd.f32 %v212_v53, %v733_v18  ;;  %v221_v9 = vadd.f32 %v213_v56, %v733_v18 }
  0x97   :  { %v737_v22 = vpop.permute.xlu1 %60  ;;  %v471_v10 = vrot.slane %v778_v55, %v762_v39  ;;  %v865_v55 = vrot.slane %v437_v4, %v762_v39  ;;  %v868_v53 = vrot.slane %v441_v35, %v762_v39  ;;  %v874_v56 = vrot.slane %v475_v25, %v762_v39 }
  0x98   :  { %v69_v28 = vpop.permute.xlu0 %68 }
  0x99   :  { %v279_v33 = vmul.f32 %v790_v63, %v69_v28  ;;  %v280_v41 = vmul.f32 %v792_v0, %v69_v28 }
  0x9b   :  { %v741_v24 = vpop.permute.xlu1 %64  ;;  %v287_v38 = vadd.f32 %v279_v33, %v252_v36  ;;  %v288_v62 = vadd.f32 %v280_v41, %v253_v48  ;;  %v255_v36 = vadd.f32 %v247_v17, %v221_v9 }
  0x9c   :  { %v751_v31 = vpop.permute.xlu0 %80 }
  0xa0   :  { %v745_v26 = vpop.permute.xlu1 %72 }
  0xa1   :  { %v755_v34 = vpop.permute.xlu0 %88  ;;  %v281_v13 = vmul.f32 %v790_v63, %v745_v26  ;;  %v282_v20 = vmul.f32 %v792_v0, %v745_v26  ;;  %v871_v26 = vrot.slane %v471_v10, %v762_v39 }
  0xa4   :  { %v747_v27 = vpop.permute.xlu1 %76 }
  0xa6   :  { %v766_v45 = vpop.permute.xlu0 %104 }
  0xa7   :  { %v349_v17 = vmul.f32 %v809_v43, %v766_v45  ;;  %v350_v4 = vmul.f32 %v812_v16, %v766_v45 }
  0xa9   :  { %v749_v29 = vpop.permute.xlu1 %84 }
  0xaa   :  { %v776_v54 = vpop.permute.xlu0 %108  ;;  %v313_v49 = vmul.f32 %v800_v12, %v749_v29  ;;  %v314_v28 = vmul.f32 %v806_v42, %v749_v29 }
  0xac   :  { %v321_v5 = vadd.f32 %v313_v49, %v287_v38  ;;  %v322_v6 = vadd.f32 %v314_v28, %v288_v62  ;;  %v290_v62 = vadd.f32 %v282_v20, %v255_v36 }
  0xae   :  { %v753_v32 = vpop.permute.xlu1 %100 }
  0xaf   :  { %v133_v11 = vpop.permute.xlu0 %132  ;;  %v347_v1 = vmul.f32 %v809_v43, %v753_v32  ;;  %v348_v29 = vmul.f32 %v812_v16, %v753_v32 }
  0xb0   :  { %v417_v28 = vmul.f32 %v828_v57, %v133_v11  ;;  %v418_v40 = vmul.f32 %v830_v61, %v133_v11  ;;  %v316_v11 = vmul.f32 %v806_v42, %v755_v34 }
  0xb1   :  { %v355_v33 = vadd.f32 %v347_v1, %v321_v5  ;;  %v356_v41 = vadd.f32 %v348_v29, %v322_v6  ;;  %v315_v1 = vmul.f32 %v800_v12, %v755_v34 }
  0xb2   :  { %v324_v10 = vadd.f32 %v316_v11, %v290_v62  ;;  %v284_v62 = vmul.f32 %v792_v0, %v747_v27 }
  0xb3   :  { %v757_v37 = vpop.permute.xlu1 %92  ;;  %v822_v52 = vpop.permute.xlu0 %136 }
  0xb8   :  { %v768_v46 = vpop.permute.xlu1 %116  ;;  %v858_v47 = vpop.permute.xlu0 %128 }
  0xb9   :  { %v382_v7 = vmul.f32 %v814_v21, %v768_v46  ;;  %v383_v32 = vmul.f32 %v816_v44, %v768_v46  ;;  %v254_v46 = vadd.f32 %v246_v3, %v220_v8  ;;  %v214_v3 = vmul.f32 %v772_v50, %v735_v19 }
  0xba   :  { %v215_v8 = vmul.f32 %v774_v51, %v735_v19  ;;  %v249_v19 = vmul.f32 %v786_v59, %v737_v22 }
  0xbb   :  { %v390_v18 = vadd.f32 %v382_v7, %v355_v33  ;;  %v391_v49 = vadd.f32 %v383_v32, %v356_v41  ;;  %v289_v38 = vadd.f32 %v281_v13, %v254_v46  ;;  %v222_v33 = vadd.f32 %v214_v3, %v727_v14 }
  0xbc   :  { %v216_v41 = vmul.f32 %v772_v50, %v739_v23  ;;  %v248_v46 = vmul.f32 %v783_v58, %v737_v22  ;;  %v419_v50 = vmul.f32 %v828_v57, %v822_v52  ;;  %v420_v22 = vmul.f32 %v830_v61, %v822_v52 }
  0xbd   :  { %v788_v60 = vpop.permute.xlu1 %96  ;;  %v165_v29 = vpop.permute.xlu0 %164  ;;  %v425_v39 = vadd.f32 %v417_v28, %v390_v18  ;;  %v426_v35 = vadd.f32 %v418_v40, %v391_v49  ;;  %v323_v9 = vadd.f32 %v315_v1, %v289_v38  ;;  %v358_v18 = vadd.f32 %v350_v4, %v324_v10 }
  0xbe   :  { %v486_v32 = vmul.f32 %v871_v26, %v165_v29  ;;  %v487_v34 = vmul.f32 %v874_v56, %v165_v29  ;;  %v283_v38 = vmul.f32 %v790_v63, %v747_v27  ;;  %v256_v3 = vadd.f32 %v248_v46, %v222_v33 }
  0xbf   :  { %v357_v36 = vadd.f32 %v349_v17, %v323_v9  ;;  %v317_v4 = vmul.f32 %v800_v12, %v757_v37  ;;  %v250_v27 = vmul.f32 %v783_v58, %v741_v24  ;;  %v318_v52 = vmul.f32 %v806_v42, %v757_v37 }
  0xc0   :  { %v224_v58 = vadd.f32 %v216_v41, %v729_v15  ;;  %v351_v37 = vmul.f32 %v809_v43, %v776_v54  ;;  %v352_v10 = vmul.f32 %v812_v16, %v776_v54  ;;  %v285_v33 = vmul.f32 %v790_v63, %v751_v31 }
  0xc1   :  { %v169_v29 = vpop.permute.xlu0 %168  ;;  %v286_v41 = vmul.f32 %v792_v0, %v751_v31 }
  0xc2   :  { %v802_v30 = vpop.permute.xlu1 %120 }
  0xc3   :  { %v384_v25 = vmul.f32 %v814_v21, %v802_v30  ;;  %v385_v45 = vmul.f32 %v816_v44, %v802_v30  ;;  %v223_v30 = vadd.f32 %v215_v8, %v727_v14  ;;  %v217_v14 = vmul.f32 %v774_v51, %v739_v23 }
  0xc4   :  { %v489_v23 = vmul.f32 %v874_v56, %v169_v29 }
  0xc5   :  { %v392_v1 = vadd.f32 %v384_v25, %v357_v36  ;;  %v393_v11 = vadd.f32 %v385_v45, %v358_v18  ;;  %v257_v17 = vadd.f32 %v249_v19, %v223_v30 }
  0xc7   :  { %v836_v2 = vpop.permute.xlu1 %112  ;;  %v427_v51 = vadd.f32 %v419_v50, %v392_v1 }
  0xcc   :  { %v860_v48 = vpop.permute.xlu1 %124 }
  0xcd   :  { %v387_v46 = vmul.f32 %v816_v44, %v860_v48 }
  0xd1   :  { %v149_v5 = vpop.permute.xlu1 %148 }
  0xd2   :  { %v452_v6 = vmul.f32 %v865_v55, %v149_v5  ;;  %v453_v7 = vmul.f32 %v868_v53, %v149_v5  ;;  %v292_v5 = vadd.f32 %v284_v62, %v257_v17  ;;  %v354_v62 = vmul.f32 %v812_v16, %v836_v2 }
  0xd3   :  { %v389_v16 = vmul.f32 %v816_v44, %v858_v47 }
  0xd4   :  { %v460_v13 = vadd.f32 %v452_v6, %v425_v39  ;;  %v461_v20 = vadd.f32 %v453_v7, %v426_v35  ;;  %v251_v39 = vmul.f32 %v786_v59, %v741_v24  ;;  %v291_v35 = vadd.f32 %v283_v38, %v256_v3 }
  0xd5   :  { %v488_v7 = vmul.f32 %v871_v26, %v169_v29  ;;  %v225_v24 = vadd.f32 %v217_v14, %v729_v15  ;;  %v326_v9 = vadd.f32 %v318_v52, %v292_v5  ;;  %v386_v15 = vmul.f32 %v814_v21, %v860_v48 }
  0xd6   :  { %v494_v49 = vadd.f32 %v486_v32, %v460_v13  ;;  %v495_v28 = vadd.f32 %v487_v34, %v461_v20  ;;  %v141_v40 = vpop.permute.xlu1 %140  ;;  %v428_v32 = vadd.f32 %v420_v22, %v393_v11  ;;  %v325_v59 = vadd.f32 %v317_v4, %v291_v35 }
  0xd7   :  { %v258_v13 = vadd.f32 %v250_v27, %v224_v58  ;;  %v259_v20 = vadd.f32 %v251_v39, %v225_v24  ;;  %v360_v63 = vadd.f32 %v352_v10, %v326_v9  ;;  %v421_v30 = vmul.f32 %v828_v57, %v141_v40 }
  0xd8   :  { %534 = vxpose.xlu1.b32.start [1/4] (short) %v495_v28, 128  ;;  %502 = vxpose.xlu0.b32.start [1/4] (short) %v494_v49, 128  ;;  %v359_v54 = vadd.f32 %v351_v37, %v325_v59  ;;  %v319_v49 = vmul.f32 %v800_v12, %v788_v60  ;;  %v320_v28 = vmul.f32 %v806_v42, %v788_v60  ;;  %v173_v60 = vpop.permute.xlu0 %172 }
  0xd9   :  { %v422_v31 = vmul.f32 %v830_v61, %v141_v40  ;;  %v293_v0 = vadd.f32 %v285_v33, %v258_v13  ;;  %v294_v38 = vadd.f32 %v286_v41, %v259_v20  ;;  %v353_v48 = vmul.f32 %v809_v43, %v836_v2 }
  0xda   :  { %v394_v50 = vadd.f32 %v386_v15, %v359_v54  ;;  %v395_v12 = vadd.f32 %v387_v46, %v360_v63  ;;  %v388_v43 = vmul.f32 %v814_v21, %v858_v47  ;;  %v490_v2 = vmul.f32 %v871_v26, %v173_v60 }
  0xdb   :  { %v153_v6 = vpop.permute.xlu1 %152  ;;  %v327_v1 = vadd.f32 %v319_v49, %v293_v0  ;;  %v328_v11 = vadd.f32 %v320_v28, %v294_v38  ;;  %v491_v4 = vmul.f32 %v874_v56, %v173_v60 }
  0xdc   :  { %v454_v34 = vmul.f32 %v865_v55, %v153_v6  ;;  %v455_v8 = vmul.f32 %v868_v53, %v153_v6  ;;  %v429_v22 = vadd.f32 %v421_v30, %v394_v50  ;;  %v430_v29 = vadd.f32 %v422_v31, %v395_v12 }
  0xdd   :  { %v361_v3 = vadd.f32 %v353_v48, %v327_v1  ;;  %v362_v17 = vadd.f32 %v354_v62, %v328_v11 }
  0xde   :  { %v462_v25 = vadd.f32 %v454_v34, %v427_v51  ;;  %v463_v45 = vadd.f32 %v455_v8, %v428_v32 }
  0xdf   :  { %v397_v51 = vadd.f32 %v389_v16, %v362_v17 }
  0xe0   :  { %v496_v19 = vadd.f32 %v488_v7, %v462_v25  ;;  %v497_v36 = vadd.f32 %v489_v23, %v463_v45  ;;  %v145_v18 = vpop.permute.xlu1 %144  ;;  %v396_v23 = vadd.f32 %v388_v43, %v361_v3 }
  0xe1   :  { %v423_v52 = vmul.f32 %v828_v57, %v145_v18  ;;  %v424_v35 = vmul.f32 %v830_v61, %v145_v18 }
  0xe2   :  { %535 = vxpose.xlu1.b32.cont [2/4] (short) %v497_v36, 128  ;;  %503 = vxpose.xlu0.b32.cont [2/4] (short) %v496_v19, 128 }
  0xe3   :  { %v431_v44 = vadd.f32 %v423_v52, %v396_v23  ;;  %v432_v47 = vadd.f32 %v424_v35, %v397_v51 }
  0xe5   :  { %v157_v42 = vpop.permute.xlu1 %156 }
  0xe6   :  { %v456_v40 = vmul.f32 %v865_v55, %v157_v42  ;;  %v457_v14 = vmul.f32 %v868_v53, %v157_v42 }
  0xe8   :  { %v464_v27 = vadd.f32 %v456_v40, %v429_v22  ;;  %v465_v39 = vadd.f32 %v457_v14, %v430_v29 }
  0xe9   :  { %v161_v5 = vpop.permute.xlu1 %160 }
  0xea   :  { %v498_v6 = vadd.f32 %v490_v2, %v464_v27  ;;  %v499_v7 = vadd.f32 %v491_v4, %v465_v39  ;;  %v458_v21 = vmul.f32 %v865_v55, %v161_v5  ;;  %v459_v32 = vmul.f32 %v868_v53, %v161_v5 }
  0xec   :  { %536 = vxpose.xlu1.b32.cont [3/4] (short) %v499_v7, 128  ;;  %504 = vxpose.xlu0.b32.cont [3/4] (short) %v498_v6, 128  ;;  %v466_v8 = vadd.f32 %v458_v21, %v431_v44  ;;  %v467_v58 = vadd.f32 %v459_v32, %v432_v47 }
  0xee   :  { %v177_v34 = vpop.permute.xlu1 %176 }
  0xef   :  { %v492_v57 = vmul.f32 %v871_v26, %v177_v34  ;;  %v493_v61 = vmul.f32 %v874_v56, %v177_v34 }
  0xf1   :  { %v500_v24 = vadd.f32 %v492_v57, %v466_v8  ;;  %v501_v59 = vadd.f32 %v493_v61, %v467_v58 }
  0xf3   :  { %537 = vxpose.xlu1.b32.end [4/4] (short) %v501_v59, 128  ;;  %505 = vxpose.xlu0.b32.end [4/4] (short) %v500_v24, 128 }
 0x167   :  { %v550_v37 = vpop.trf.xlu1  ;;  %v518_v55 = vpop.trf.xlu0 }
 0x168   :  { %583 = vst.msk [vmem:[%s1094_s2 + $0x80] sm:$0xff] %vm566_vm0, %v550_v37  ;;  %567 = vst.msk [vmem:[%s1094_s2] sm:$0xff] %vm566_vm0, %v518_v55 }
 0x16b   :  { %v551_v53 = vpop.trf.xlu1  ;;  %v519_v26 = vpop.trf.xlu0 }
 0x16c   :  { %584 = vst.msk [vmem:[%s1094_s2 + $0x88] sm:$0xff] %vm566_vm0, %v551_v53  ;;  %568 = vst.msk [vmem:[%s1094_s2 + $0x8] sm:$0xff] %vm566_vm0, %v519_v26 }
 0x16f   :  { %v552_v56 = vpop.trf.xlu1  ;;  %v520_v9 = vpop.trf.xlu0 }
 0x170   :  { %585 = vst.msk [vmem:[%s1094_s2 + $0x90] sm:$0xff] %vm566_vm0, %v552_v56  ;;  %569 = vst.msk [vmem:[%s1094_s2 + $0x10] sm:$0xff] %vm566_vm0, %v520_v9 }
 0x173   :  { %v553_v10 = vpop.trf.xlu1  ;;  %v521_v25 = vpop.trf.xlu0 }
 0x174   :  { %586 = vst.msk [vmem:[%s1094_s2 + $0x98] sm:$0xff] %vm566_vm0, %v553_v10  ;;  %570 = vst.msk [vmem:[%s1094_s2 + $0x18] sm:$0xff] %vm566_vm0, %v521_v25 }
 0x177   :  { %v554_v45 = vpop.trf.xlu1  ;;  %v522_v13 = vpop.trf.xlu0 }
 0x178   :  { %587 = vst.msk [vmem:[%s1094_s2 + $0xa0] sm:$0xff] %vm566_vm0, %v554_v45  ;;  %571 = vst.msk [vmem:[%s1094_s2 + $0x20] sm:$0xff] %vm566_vm0, %v522_v13 }
 0x17b   :  { %v555_v20 = vpop.trf.xlu1  ;;  %v523_v33 = vpop.trf.xlu0 }
 0x17c   :  { %588 = vst.msk [vmem:[%s1094_s2 + $0xa8] sm:$0xff] %vm566_vm0, %v555_v20  ;;  %572 = vst.msk [vmem:[%s1094_s2 + $0x28] sm:$0xff] %vm566_vm0, %v523_v33 }
 0x17f   :  { %v556_v41 = vpop.trf.xlu1  ;;  %v524_v15 = vpop.trf.xlu0 }
 0x180   :  { %589 = vst.msk [vmem:[%s1094_s2 + $0xb0] sm:$0xff] %vm566_vm0, %v556_v41  ;;  %573 = vst.msk [vmem:[%s1094_s2 + $0x30] sm:$0xff] %vm566_vm0, %v524_v15 }
 0x183   :  { %v557_v46 = vpop.trf.xlu1  ;;  %v525_v19 = vpop.trf.xlu0 }
 0x184   :  { %590 = vst.msk [vmem:[%s1094_s2 + $0xb8] sm:$0xff] %vm566_vm0, %v557_v46  ;;  %574 = vst.msk [vmem:[%s1094_s2 + $0x38] sm:$0xff] %vm566_vm0, %v525_v19 }
 0x187   :  { %v558_v36 = vpop.trf.xlu1  ;;  %v526_v18 = vpop.trf.xlu0 }
 0x188   :  { %591 = vst.msk [vmem:[%s1094_s2 + $0xc0] sm:$0xff] %vm566_vm0, %v558_v36  ;;  %575 = vst.msk [vmem:[%s1094_s2 + $0x40] sm:$0xff] %vm566_vm0, %v526_v18 }
 0x18b   :  { %v559_v54 = vpop.trf.xlu1  ;;  %v527_v49 = vpop.trf.xlu0 }
 0x18c   :  { %592 = vst.msk [vmem:[%s1094_s2 + $0xc8] sm:$0xff] %vm566_vm0, %v559_v54  ;;  %576 = vst.msk [vmem:[%s1094_s2 + $0x48] sm:$0xff] %vm566_vm0, %v527_v49 }
 0x18f   :  { %v560_v28 = vpop.trf.xlu1  ;;  %v528_v63 = vpop.trf.xlu0 }
 0x190   :  { %593 = vst.msk [vmem:[%s1094_s2 + $0xd0] sm:$0xff] %vm566_vm0, %v560_v28  ;;  %577 = vst.msk [vmem:[%s1094_s2 + $0x50] sm:$0xff] %vm566_vm0, %v528_v63 }
 0x193   :  { %v561_v30 = vpop.trf.xlu1  ;;  %v529_v31 = vpop.trf.xlu0 }
 0x194   :  { %594 = vst.msk [vmem:[%s1094_s2 + $0xd8] sm:$0xff] %vm566_vm0, %v561_v30  ;;  %578 = vst.msk [vmem:[%s1094_s2 + $0x58] sm:$0xff] %vm566_vm0, %v529_v31 }
 0x197   :  { %v562_v0 = vpop.trf.xlu1  ;;  %v530_v38 = vpop.trf.xlu0 }
 0x198   :  { %595 = vst.msk [vmem:[%s1094_s2 + $0xe0] sm:$0xff] %vm566_vm0, %v562_v0  ;;  %579 = vst.msk [vmem:[%s1094_s2 + $0x60] sm:$0xff] %vm566_vm0, %v530_v38 }
 0x19b   :  { %v563_v48 = vpop.trf.xlu1  ;;  %v531_v62 = vpop.trf.xlu0 }
 0x19c   :  { %596 = vst.msk [vmem:[%s1094_s2 + $0xe8] sm:$0xff] %vm566_vm0, %v563_v48  ;;  %580 = vst.msk [vmem:[%s1094_s2 + $0x68] sm:$0xff] %vm566_vm0, %v531_v62 }
 0x19f   :  { %v564_v50 = vpop.trf.xlu1  ;;  %v532_v12 = vpop.trf.xlu0 }
 0x1a0   :  { %597 = vst.msk [vmem:[%s1094_s2 + $0xf0] sm:$0xff] %vm566_vm0, %v564_v50  ;;  %581 = vst.msk [vmem:[%s1094_s2 + $0x70] sm:$0xff] %vm566_vm0, %v532_v12 }
 0x1a3   :  { %v565_v1 = vpop.trf.xlu1  ;;  %v533_v11 = vpop.trf.xlu0 }
 0x1a4   :  { %598 = vst.msk [vmem:[%s1094_s2 + $0xf8] sm:$0xff] %vm566_vm0, %v565_v1  ;;  %582 = vst.msk [vmem:[%s1094_s2 + $0x78] sm:$0xff] %vm566_vm0, %v533_v11 }

</bundles_post_ra>
